<compile_context>
chip_gen: v7x
topology: tpu7x:2x2x1
jax: 0.10.0
libtpu: 0.0.40
codegen_flags: <defaults>
</compile_context>

<pallas_src>
import math

import numpy as np
import jax
import jax.numpy as jnp
from jax.experimental import pallas as pl
from jax.experimental.pallas import tpu as pltpu

LANE = 128                             # TPU lane width (last dim of every block)
TS_MAX = 2048                          # sublanes per grid step (2048*128 pts -> 3 MiB/block)
VMEM_LIMIT_BYTES = 32 * 1024 * 1024    # in+out double-buffered at ts=2048 is ~12 MiB
_SQRT3_INV = 1.0 / math.sqrt(3.0)


def _tiling(n_points, ts_max):
    """(sublanes per tile, #tiles, padded point count) -- all Python ints."""
    t = -(-n_points // LANE)                 # ceil(N / 128) lane-groups
    if t <= ts_max:
        # Single tile: block sublane dim equals the full array dim, so no
        # multiple-of-8 rounding is needed -> N % 128 == 0 means zero padding.
        return t, 1, t * LANE
    n_tiles = -(-t // ts_max)
    ts = -(-t // n_tiles)
    ts = ((ts + 7) // 8) * 8                 # sublane dim multiple of 8
    return ts, n_tiles, ts * n_tiles * LANE


# ---------------------------------------------------------------------------
# Kernel 1: per-batch coordinate sums + 6 unique Gram terms of the centered
# cloud.  ref_ref (SMEM, (3B,)): centering point (= last point, which is also
# the edge-pad value, so padded points contribute exactly 0).
# Output accumulator block: (1, 1, 9, SUB, 128); sublane/lane reductions are
# finished in the glue (tiny array).
# ---------------------------------------------------------------------------
def _stats_kernel(ref_ref, pc_ref, out_ref):
    b = pl.program_id(0)
    k = pl.program_id(2)

    @pl.when(k == 0)
    def _():
        out_ref[...] = jnp.zeros_like(out_ref)

    c0 = ref_ref[3 * b + 0]
    c1 = ref_ref[3 * b + 1]
    c2 = ref_ref[3 * b + 2]

    x0 = pc_ref[0, 0] - c0                   # (ts, 128)
    x1 = pc_ref[0, 1] - c1
    x2 = pc_ref[0, 2] - c2

    ts = x0.shape[0]
    if ts % 8 == 0:
        # VALU-only tree: split sublane groups (free reshape) and add vregs.
        def rsum(v):
            return jnp.sum(v.reshape(ts // 8, 8, LANE), axis=0)   # (8, 128)
    else:
        # Tiny single-tile case (ts < 8): cheap XLU cross-sublane reduce.
        def rsum(v):
            return jnp.sum(v, axis=0, keepdims=True)              # (1, 128)

    out_ref[0, 0, 0] += rsum(x0)
    out_ref[0, 0, 1] += rsum(x1)
    out_ref[0, 0, 2] += rsum(x2)
    out_ref[0, 0, 3] += rsum(x0 * x0)
    out_ref[0, 0, 4] += rsum(x1 * x1)
    out_ref[0, 0, 5] += rsum(x2 * x2)
    out_ref[0, 0, 6] += rsum(x0 * x1)
    out_ref[0, 0, 7] += rsum(x0 * x2)
    out_ref[0, 0, 8] += rsum(x1 * x2)


def _batched_stats(ref_flat, pc4, ts, n_tiles):
    B = pc4.shape[0]
    sub = 8 if ts % 8 == 0 else 1
    # Split the tile axis in two "parallel" halves so both v7x TensorCores get
    # work even when B is small (no-op on single-core chips).
    n_par = 2 if (n_tiles >= 2 and n_tiles % 2 == 0) else 1
    k_per = n_tiles // n_par
    return pl.pallas_call(
        _stats_kernel,
        out_shape=jax.ShapeDtypeStruct((B, n_par, 9, sub, LANE), jnp.float32),
        grid_spec=pltpu.PrefetchScalarGridSpec(
            num_scalar_prefetch=0,
            grid=(B, n_par, k_per),
            in_specs=[pl.BlockSpec(memory_space=pltpu.MemorySpace.SMEM),
                      pl.BlockSpec((1, 3, ts, LANE),
                                   lambda b, h, k: (b, 0, h * k_per + k, 0))],
            out_specs=pl.BlockSpec((1, 1, 9, sub, LANE),
                                   lambda b, h, k: (b, h, 0, 0, 0)),
        ),
        compiler_params=pltpu.CompilerParams(
            dimension_semantics=("parallel", "parallel", "arbitrary"),
            vmem_limit_bytes=VMEM_LIMIT_BYTES),
    )(ref_flat, pc4)


# ---------------------------------------------------------------------------
# Kernel 2: apply the precomputed 3x3 rotation matrix to every point.
# params (SMEM, (9B,)): row-major R per batch.  Pure streaming: 9 mul + 6 add
# per point on full (ts, 128) slabs -> HBM-bound on all generations.
# ---------------------------------------------------------------------------
def _rotate_kernel(params_ref, pc_ref, out_ref):
    b = pl.program_id(0)
    r00 = params_ref[9 * b + 0]; r01 = params_ref[9 * b + 1]; r02 = params_ref[9 * b + 2]
    r10 = params_ref[9 * b + 3]; r11 = params_ref[9 * b + 4]; r12 = params_ref[9 * b + 5]
    r20 = params_ref[9 * b + 6]; r21 = params_ref[9 * b + 7]; r22 = params_ref[9 * b + 8]

    x0 = pc_ref[0, 0]                        # (ts, 128)
    x1 = pc_ref[0, 1]
    x2 = pc_ref[0, 2]

    out_ref[0, 0] = r00 * x0 + r01 * x1 + r02 * x2
    out_ref[0, 1] = r10 * x0 + r11 * x1 + r12 * x2
    out_ref[0, 2] = r20 * x0 + r21 * x1 + r22 * x2


def _apply_rotation(params_flat, pc4, ts, n_tiles):
    B = pc4.shape[0]
    T = ts * n_tiles
    return pl.pallas_call(
        _rotate_kernel,
        out_shape=jax.ShapeDtypeStruct((B, 3, T, LANE), jnp.float32),
        grid_spec=pltpu.PrefetchScalarGridSpec(
            num_scalar_prefetch=0,
            grid=(B, n_tiles),
            in_specs=[pl.BlockSpec(memory_space=pltpu.MemorySpace.SMEM),
                      pl.BlockSpec((1, 3, ts, LANE),
                                   lambda b, k: (b, 0, k, 0))],
            out_specs=pl.BlockSpec((1, 3, ts, LANE),
                                   lambda b, k: (b, 0, k, 0)),
        ),
        compiler_params=pltpu.CompilerParams(
            dimension_semantics=("parallel", "parallel"),
            vmem_limit_bytes=VMEM_LIMIT_BYTES),
    )(params_flat, pc4)


# ---------------------------------------------------------------------------
# Closed-form smallest eigenvector of a batch of symmetric 3x3 matrices
# (Cardano's formula + cross-product null vector).
# ---------------------------------------------------------------------------
def _smallest_eigvec_sym3x3(a00, a11, a22, a01, a02, a12):
    q = (a00 + a11 + a22) / 3.0
    p1 = a01 * a01 + a02 * a02 + a12 * a12
    p2 = (a00 - q) ** 2 + (a11 - q) ** 2 + (a22 - q) ** 2 + 2.0 * p1
    p = jnp.sqrt(jnp.maximum(p2 / 6.0, 1e-30))
    b00 = (a00 - q) / p
    b11 = (a11 - q) / p
    b22 = (a22 - q) / p
    b01 = a01 / p
    b02 = a02 / p
    b12 = a12 / p
    det_b = (b00 * (b11 * b22 - b12 * b12)
             - b01 * (b01 * b22 - b12 * b02)
             + b02 * (b01 * b12 - b11 * b02))
    r = jnp.clip(0.5 * det_b, -1.0, 1.0)
    phi = jnp.arccos(r) / 3.0
    lam_min = q + 2.0 * p * jnp.cos(phi + 2.0 * jnp.pi / 3.0)   # smallest eig

    m00 = a00 - lam_min
    m11 = a11 - lam_min
    m22 = a22 - lam_min
    r0 = jnp.stack([m00, a01, a02], axis=-1)                    # (B, 3)
    r1 = jnp.stack([a01, m11, a12], axis=-1)
    r2 = jnp.stack([a02, a12, m22], axis=-1)
    c01 = jnp.cross(r0, r1)
    c02 = jnp.cross(r0, r2)
    c12 = jnp.cross(r1, r2)
    n01 = jnp.sum(c01 * c01, axis=-1, keepdims=True)
    n02 = jnp.sum(c02 * c02, axis=-1, keepdims=True)
    n12 = jnp.sum(c12 * c12, axis=-1, keepdims=True)
    c = jnp.where((n01 >= n02) & (n01 >= n12), c01,
                  jnp.where(n02 >= n12, c02, c12))
    nrm = jnp.sqrt(jnp.sum(c * c, axis=-1, keepdims=True))
    fallback = jnp.broadcast_to(jnp.array([0.0, 0.0, 1.0], jnp.float32),
                                c.shape)
    return jnp.where(nrm > 1e-20, c / jnp.maximum(nrm, 1e-20), fallback)


# ---------------------------------------------------------------------------
# Full forward pass (== RotatePCA.forward).
# ---------------------------------------------------------------------------
def rotate_pca(pc1, features=None, *, ts_max=TS_MAX):
    pc1 = pc1.astype(jnp.float32)
    B, C, N = pc1.shape
    assert C == 3

    ts, n_tiles, Np = _tiling(N, ts_max)
    # When N % 128 == 0 (typical point-cloud sizes) the 4-D view is a free
    # reshape: no padding pass and no final slice pass.
    # TODO(synk): for ragged N the edge-pad + final slice below are still two
    # extra full HBM passes; removing them needs in-kernel tail masking on a
    # 3-D (B,3,N) layout, which sacrifices sublane density in the hot loop.
    if Np == N:
        pc_pad = pc1
    else:
        # Edge-pad with the last point so that, after centering at the last
        # point, padded entries contribute exactly zero to the statistics.
        pc_pad = jnp.pad(pc1, ((0, 0), (0, 0), (0, Np - N)), mode="edge")
    pc4 = pc_pad.reshape(B, 3, n_tiles * ts, LANE)
    ref_flat = pc1[:, :, N - 1].reshape(B * 3)                  # (3B,) flat SMEM

    # --- covariance of the centered cloud (Pallas reduction over points) --
    stats = _batched_stats(ref_flat, pc4, ts, n_tiles)          # (B,np,9,SUB,128)
    stats = jnp.sum(stats, axis=(1, 3, 4))                      # (B, 9)
    s0, s1, s2 = stats[:, 0], stats[:, 1], stats[:, 2]
    g00, g11, g22 = stats[:, 3], stats[:, 4], stats[:, 5]
    g01, g02, g12 = stats[:, 6], stats[:, 7], stats[:, 8]
    inv_n = 1.0 / float(N)
    c00 = g00 - s0 * s0 * inv_n
    c11 = g11 - s1 * s1 * inv_n
    c22 = g22 - s2 * s2 * inv_n
    c01 = g01 - s0 * s1 * inv_n
    c02 = g02 - s0 * s2 * inv_n
    c12 = g12 - s1 * s2 * inv_n

    # TODO(synk): torch.pca_lowrank's randomized low-rank SVD is replaced by an
    # exact closed-form 3x3 symmetric eigensolver (same least-variance
    # subspace; eigenvector sign is ambiguous in both).
    vec_low = _smallest_eigvec_sym3x3(c00, c11, c22, c01, c02, c12)  # (B, 3)

    # --- rotation aligning vec_low with (1,1,1)/sqrt(3) -------------------
    trans_norm = jnp.full((B, 3), _SQRT3_INV, jnp.float32)
    rot_axis = jnp.cross(vec_low, trans_norm)
    sin_rot = jnp.sqrt(jnp.sum(rot_axis * rot_axis, axis=1))
    cos_rot = jnp.sum(vec_low * trans_norm, axis=1)
    # Degenerate (vec_low parallel to the target): safe divide gives axis=0,
    # so R = cos*I (identity for the parallel case, -I for the antiparallel
    # case); the PyTorch reference would NaN here.
    axis = rot_axis / jnp.maximum(sin_rot, 1e-20)[:, None]
    a0, a1, a2 = axis[:, 0], axis[:, 1], axis[:, 2]
    c = cos_rot
    s = sin_rot
    t = 1.0 - c
    params = jnp.stack(
        [c + t * a0 * a0, t * a0 * a1 - s * a2, t * a0 * a2 + s * a1,
         t * a0 * a1 + s * a2, c + t * a1 * a1, t * a1 * a2 - s * a0,
         t * a0 * a2 - s * a1, t * a1 * a2 + s * a0, c + t * a2 * a2],
        axis=1).astype(jnp.float32).reshape(B * 9)              # (9B,) flat SMEM

    # --- rotate all points (Pallas streaming hot path) --------------------
    out4 = _apply_rotation(params, pc4, ts, n_tiles)            # (B,3,T,128)
    out = out4.reshape(B, 3, Np)
    if Np != N:
        out = out[:, :, :N]
    return out


# ---------------------------------------------------------------------------
# self-test
# ---------------------------------------------------------------------------
def _check(pc1, rot_pts):
    B, C, N = pc1.shape
    assert rot_pts.shape == (B, C, N) and rot_pts.dtype == jnp.float32
    # (1) per-point norms are preserved by the rotation.
    n_in = np.linalg.norm(np.asarray(pc1), axis=1)
    n_out = np.linalg.norm(np.asarray(rot_pts), axis=1)
    assert np.allclose(n_in, n_out, rtol=1e-4, atol=1e-4)
    # (2) least-variance axis of the rotated cloud is +-(1,1,1)/sqrt(3).
    y = np.asarray(rot_pts).transpose(0, 2, 1)
    yc = y - y.mean(axis=1, keepdims=True)
    cov_out = np.einsum("bni,bnj->bij", yc, yc)
    _, v = np.linalg.eigh(cov_out)
    axis_out = v[:, :, 0]
    target = np.ones(3) / np.sqrt(3.0)
    assert np.allclose(np.abs(axis_out @ target), 1.0, atol=1e-3)


if __name__ == "__main__":
    fwd = jax.jit(rotate_pca)

    # Small canonical shape, N % 128 == 0 -> no pad / no slice path.
    B, C, N = 2, 3, 256
    pc1 = jax.random.normal(jax.random.PRNGKey(0), (B, C, N), dtype=jnp.float32)
    rot_pts = jax.block_until_ready(fwd(pc1))
    _check(pc1, rot_pts)

    # N not a multiple of the lane width -> exercises the ragged (edge-pad) path.
    pc2 = jax.random.normal(jax.random.PRNGKey(1), (B, C, 333), dtype=jnp.float32)
    rot2 = jax.block_until_ready(jax.jit(rotate_pca)(pc2))
    _check(pc2, rot2)

    # Multi-tile + two-way-parallel stats + VALU-tree reduction path, exercised
    # at a small shape by lowering the per-tile cap (anisotropic cloud so the
    # least-variance axis is well separated).
    pc3 = jax.random.normal(jax.random.PRNGKey(2), (B, C, 8192), dtype=jnp.float32)
    pc3 = pc3 * jnp.array([1.0, 0.6, 0.25], jnp.float32)[None, :, None]
    rot3 = jax.block_until_ready(
        jax.jit(lambda x: rotate_pca(x, ts_max=16))(pc3))
    _check(pc3, rot3)

    print("KERNEL_OK")
</pallas_src>

<mosaic_0001>
module attributes {stable_mosaic.version = 11 : i64} {
  func.func @_stats_kernel(%arg0: i32, %arg1: i32, %arg2: i32, %arg3: memref<6xf32, #tpu.memory_space<smem>>, %arg4: memref<1x3x2x128xf32, #tpu.memory_space<vmem>>, %arg5: memref<1x1x9x1x128xf32, #tpu.memory_space<vmem>>) attributes {dimension_semantics = [#tpu.dimension_semantics<parallel>, #tpu.dimension_semantics<parallel>, #tpu.dimension_semantics<arbitrary>], iteration_bounds = array<i64: 2, 1, 1>, scalar_prefetch = 0 : i64, scratch_operands = 0 : i64, tpu.core_type = #tpu.core_type<tc>, window_params = [{transform_indices = @transform_0, window_bounds = array<i64: 6>}, {transform_indices = @transform_1, window_bounds = array<i64: 1, 3, 2, 128>}, {transform_indices = @transform_2, window_bounds = array<i64: 1, 1, 9, 1, 128>}]} {
    %c0_i32 = arith.constant 0 : i32
    %0 = arith.cmpi eq, %arg2, %c0_i32 : i32
    %1 = arith.extui %0 : i1 to i32
    %c0_i32_0 = arith.constant 0 : i32
    %2 = arith.cmpi ne, %1, %c0_i32_0 : i32
    scf.if %2 {
      %cst_105 = arith.constant 0.000000e+00 : f32
      %105 = vector.broadcast %cst_105 : f32 to vector<1x1x9x1x128xf32>
      %c0_106 = arith.constant 0 : index
      %c0_107 = arith.constant 0 : index
      %c0_108 = arith.constant 0 : index
      %c0_109 = arith.constant 0 : index
      %c0_110 = arith.constant 0 : index
      %106 = vector.load %arg5[%c0_106, %c0_107, %c0_108, %c0_109, %c0_110] : memref<1x1x9x1x128xf32, #tpu.memory_space<vmem>>, vector<1x1x9x1x128xf32>
      tpu.vector_store %arg5[%c0_106, %c0_107, %c0_108, %c0_109, %c0_110], %105 {strides = array<i32>} : memref<1x1x9x1x128xf32, #tpu.memory_space<vmem>>, vector<1x1x9x1x128xf32>,
    } else {
    }
    %c3_i32 = arith.constant 3 : i32
    %3 = arith.muli %c3_i32, %arg0 : i32
    %c0_i32_1 = arith.constant 0 : i32
    %4 = arith.addi %3, %c0_i32_1 : i32
    %5 = arith.index_cast %4 : i32 to index
    %6 = memref.load %arg3[%5] : memref<6xf32, #tpu.memory_space<smem>>
    %c3_i32_2 = arith.constant 3 : i32
    %7 = arith.muli %c3_i32_2, %arg0 : i32
    %c1_i32 = arith.constant 1 : i32
    %8 = arith.addi %7, %c1_i32 : i32
    %9 = arith.index_cast %8 : i32 to index
    %10 = memref.load %arg3[%9] : memref<6xf32, #tpu.memory_space<smem>>
    %c3_i32_3 = arith.constant 3 : i32
    %11 = arith.muli %c3_i32_3, %arg0 : i32
    %c2_i32 = arith.constant 2 : i32
    %12 = arith.addi %11, %c2_i32 : i32
    %13 = arith.index_cast %12 : i32 to index
    %14 = memref.load %arg3[%13] : memref<6xf32, #tpu.memory_space<smem>>
    %c0 = arith.constant 0 : index
    %c0_4 = arith.constant 0 : index
    %c0_5 = arith.constant 0 : index
    %c0_6 = arith.constant 0 : index
    %15 = vector.load %arg4[%c0, %c0_4, %c0_5, %c0_6] : memref<1x3x2x128xf32, #tpu.memory_space<vmem>>, vector<1x1x2x128xf32>
    %16 = vector.shape_cast %15 : vector<1x1x2x128xf32> to vector<2x128xf32>
    %17 = vector.broadcast %6 : f32 to vector<2x128xf32>
    %18 = arith.subf %16, %17 : vector<2x128xf32>
    %c0_7 = arith.constant 0 : index
    %c1 = arith.constant 1 : index
    %c0_8 = arith.constant 0 : index
    %c0_9 = arith.constant 0 : index
    %19 = vector.load %arg4[%c0_7, %c1, %c0_8, %c0_9] : memref<1x3x2x128xf32, #tpu.memory_space<vmem>>, vector<1x1x2x128xf32>
    %20 = vector.shape_cast %19 : vector<1x1x2x128xf32> to vector<2x128xf32>
    %21 = vector.broadcast %10 : f32 to vector<2x128xf32>
    %22 = arith.subf %20, %21 : vector<2x128xf32>
    %c0_10 = arith.constant 0 : index
    %c2 = arith.constant 2 : index
    %c0_11 = arith.constant 0 : index
    %c0_12 = arith.constant 0 : index
    %23 = vector.load %arg4[%c0_10, %c2, %c0_11, %c0_12] : memref<1x3x2x128xf32, #tpu.memory_space<vmem>>, vector<1x1x2x128xf32>
    %24 = vector.shape_cast %23 : vector<1x1x2x128xf32> to vector<2x128xf32>
    %25 = vector.broadcast %14 : f32 to vector<2x128xf32>
    %26 = arith.subf %24, %25 : vector<2x128xf32>
    %c0_13 = arith.constant 0 : index
    %c0_14 = arith.constant 0 : index
    %c0_15 = arith.constant 0 : index
    %c0_16 = arith.constant 0 : index
    %c0_17 = arith.constant 0 : index
    %27 = vector.load %arg5[%c0_13, %c0_14, %c0_15, %c0_16, %c0_17] : memref<1x1x9x1x128xf32, #tpu.memory_space<vmem>>, vector<1x1x1x1x128xf32>
    %28 = vector.shape_cast %27 : vector<1x1x1x1x128xf32> to vector<1x128xf32>
    %cst = arith.constant dense<0.000000e+00> : vector<128xf32>
    %29 = vector.multi_reduction <add>, %18, %cst [0] : vector<2x128xf32> to vector<128xf32>
    %30 = vector.shape_cast %29 : vector<128xf32> to vector<1x128xf32>
    %31 = arith.addf %28, %30 : vector<1x128xf32>
    %c0_18 = arith.constant 0 : index
    %c0_19 = arith.constant 0 : index
    %c0_20 = arith.constant 0 : index
    %c0_21 = arith.constant 0 : index
    %c0_22 = arith.constant 0 : index
    %32 = vector.load %arg5[%c0_18, %c0_19, %c0_20, %c0_21, %c0_22] : memref<1x1x9x1x128xf32, #tpu.memory_space<vmem>>, vector<1x1x1x1x128xf32>
    %33 = vector.shape_cast %32 : vector<1x1x1x1x128xf32> to vector<1x128xf32>
    %34 = vector.shape_cast %31 : vector<1x128xf32> to vector<1x1x1x1x128xf32>
    tpu.vector_store %arg5[%c0_18, %c0_19, %c0_20, %c0_21, %c0_22], %34 {strides = array<i32>} : memref<1x1x9x1x128xf32, #tpu.memory_space<vmem>>, vector<1x1x1x1x128xf32>,
    %c0_23 = arith.constant 0 : index
    %c0_24 = arith.constant 0 : index
    %c1_25 = arith.constant 1 : index
    %c0_26 = arith.constant 0 : index
    %c0_27 = arith.constant 0 : index
    %35 = vector.load %arg5[%c0_23, %c0_24, %c1_25, %c0_26, %c0_27] : memref<1x1x9x1x128xf32, #tpu.memory_space<vmem>>, vector<1x1x1x1x128xf32>
    %36 = vector.shape_cast %35 : vector<1x1x1x1x128xf32> to vector<1x128xf32>
    %cst_28 = arith.constant dense<0.000000e+00> : vector<128xf32>
    %37 = vector.multi_reduction <add>, %22, %cst_28 [0] : vector<2x128xf32> to vector<128xf32>
    %38 = vector.shape_cast %37 : vector<128xf32> to vector<1x128xf32>
    %39 = arith.addf %36, %38 : vector<1x128xf32>
    %c0_29 = arith.constant 0 : index
    %c0_30 = arith.constant 0 : index
    %c1_31 = arith.constant 1 : index
    %c0_32 = arith.constant 0 : index
    %c0_33 = arith.constant 0 : index
    %40 = vector.load %arg5[%c0_29, %c0_30, %c1_31, %c0_32, %c0_33] : memref<1x1x9x1x128xf32, #tpu.memory_space<vmem>>, vector<1x1x1x1x128xf32>
    %41 = vector.shape_cast %40 : vector<1x1x1x1x128xf32> to vector<1x128xf32>
    %42 = vector.shape_cast %39 : vector<1x128xf32> to vector<1x1x1x1x128xf32>
    tpu.vector_store %arg5[%c0_29, %c0_30, %c1_31, %c0_32, %c0_33], %42 {strides = array<i32>} : memref<1x1x9x1x128xf32, #tpu.memory_space<vmem>>, vector<1x1x1x1x128xf32>,
    %c0_34 = arith.constant 0 : index
    %c0_35 = arith.constant 0 : index
    %c2_36 = arith.constant 2 : index
    %c0_37 = arith.constant 0 : index
    %c0_38 = arith.constant 0 : index
    %43 = vector.load %arg5[%c0_34, %c0_35, %c2_36, %c0_37, %c0_38] : memref<1x1x9x1x128xf32, #tpu.memory_space<vmem>>, vector<1x1x1x1x128xf32>
    %44 = vector.shape_cast %43 : vector<1x1x1x1x128xf32> to vector<1x128xf32>
    %cst_39 = arith.constant dense<0.000000e+00> : vector<128xf32>
    %45 = vector.multi_reduction <add>, %26, %cst_39 [0] : vector<2x128xf32> to vector<128xf32>
    %46 = vector.shape_cast %45 : vector<128xf32> to vector<1x128xf32>
    %47 = arith.addf %44, %46 : vector<1x128xf32>
    %c0_40 = arith.constant 0 : index
    %c0_41 = arith.constant 0 : index
    %c2_42 = arith.constant 2 : index
    %c0_43 = arith.constant 0 : index
    %c0_44 = arith.constant 0 : index
    %48 = vector.load %arg5[%c0_40, %c0_41, %c2_42, %c0_43, %c0_44] : memref<1x1x9x1x128xf32, #tpu.memory_space<vmem>>, vector<1x1x1x1x128xf32>
    %49 = vector.shape_cast %48 : vector<1x1x1x1x128xf32> to vector<1x128xf32>
    %50 = vector.shape_cast %47 : vector<1x128xf32> to vector<1x1x1x1x128xf32>
    tpu.vector_store %arg5[%c0_40, %c0_41, %c2_42, %c0_43, %c0_44], %50 {strides = array<i32>} : memref<1x1x9x1x128xf32, #tpu.memory_space<vmem>>, vector<1x1x1x1x128xf32>,
    %c0_45 = arith.constant 0 : index
    %c0_46 = arith.constant 0 : index
    %c3 = arith.constant 3 : index
    %c0_47 = arith.constant 0 : index
    %c0_48 = arith.constant 0 : index
    %51 = vector.load %arg5[%c0_45, %c0_46, %c3, %c0_47, %c0_48] : memref<1x1x9x1x128xf32, #tpu.memory_space<vmem>>, vector<1x1x1x1x128xf32>
    %52 = vector.shape_cast %51 : vector<1x1x1x1x128xf32> to vector<1x128xf32>
    %53 = arith.mulf %18, %18 : vector<2x128xf32>
    %cst_49 = arith.constant dense<0.000000e+00> : vector<128xf32>
    %54 = vector.multi_reduction <add>, %53, %cst_49 [0] : vector<2x128xf32> to vector<128xf32>
    %55 = vector.shape_cast %54 : vector<128xf32> to vector<1x128xf32>
    %56 = arith.addf %52, %55 : vector<1x128xf32>
    %c0_50 = arith.constant 0 : index
    %c0_51 = arith.constant 0 : index
    %c3_52 = arith.constant 3 : index
    %c0_53 = arith.constant 0 : index
    %c0_54 = arith.constant 0 : index
    %57 = vector.load %arg5[%c0_50, %c0_51, %c3_52, %c0_53, %c0_54] : memref<1x1x9x1x128xf32, #tpu.memory_space<vmem>>, vector<1x1x1x1x128xf32>
    %58 = vector.shape_cast %57 : vector<1x1x1x1x128xf32> to vector<1x128xf32>
    %59 = vector.shape_cast %56 : vector<1x128xf32> to vector<1x1x1x1x128xf32>
    tpu.vector_store %arg5[%c0_50, %c0_51, %c3_52, %c0_53, %c0_54], %59 {strides = array<i32>} : memref<1x1x9x1x128xf32, #tpu.memory_space<vmem>>, vector<1x1x1x1x128xf32>,
    %c0_55 = arith.constant 0 : index
    %c0_56 = arith.constant 0 : index
    %c4 = arith.constant 4 : index
    %c0_57 = arith.constant 0 : index
    %c0_58 = arith.constant 0 : index
    %60 = vector.load %arg5[%c0_55, %c0_56, %c4, %c0_57, %c0_58] : memref<1x1x9x1x128xf32, #tpu.memory_space<vmem>>, vector<1x1x1x1x128xf32>
    %61 = vector.shape_cast %60 : vector<1x1x1x1x128xf32> to vector<1x128xf32>
    %62 = arith.mulf %22, %22 : vector<2x128xf32>
    %cst_59 = arith.constant dense<0.000000e+00> : vector<128xf32>
    %63 = vector.multi_reduction <add>, %62, %cst_59 [0] : vector<2x128xf32> to vector<128xf32>
    %64 = vector.shape_cast %63 : vector<128xf32> to vector<1x128xf32>
    %65 = arith.addf %61, %64 : vector<1x128xf32>
    %c0_60 = arith.constant 0 : index
    %c0_61 = arith.constant 0 : index
    %c4_62 = arith.constant 4 : index
    %c0_63 = arith.constant 0 : index
    %c0_64 = arith.constant 0 : index
    %66 = vector.load %arg5[%c0_60, %c0_61, %c4_62, %c0_63, %c0_64] : memref<1x1x9x1x128xf32, #tpu.memory_space<vmem>>, vector<1x1x1x1x128xf32>
    %67 = vector.shape_cast %66 : vector<1x1x1x1x128xf32> to vector<1x128xf32>
    %68 = vector.shape_cast %65 : vector<1x128xf32> to vector<1x1x1x1x128xf32>
    tpu.vector_store %arg5[%c0_60, %c0_61, %c4_62, %c0_63, %c0_64], %68 {strides = array<i32>} : memref<1x1x9x1x128xf32, #tpu.memory_space<vmem>>, vector<1x1x1x1x128xf32>,
    %c0_65 = arith.constant 0 : index
    %c0_66 = arith.constant 0 : index
    %c5 = arith.constant 5 : index
    %c0_67 = arith.constant 0 : index
    %c0_68 = arith.constant 0 : index
    %69 = vector.load %arg5[%c0_65, %c0_66, %c5, %c0_67, %c0_68] : memref<1x1x9x1x128xf32, #tpu.memory_space<vmem>>, vector<1x1x1x1x128xf32>
    %70 = vector.shape_cast %69 : vector<1x1x1x1x128xf32> to vector<1x128xf32>
    %71 = arith.mulf %26, %26 : vector<2x128xf32>
    %cst_69 = arith.constant dense<0.000000e+00> : vector<128xf32>
    %72 = vector.multi_reduction <add>, %71, %cst_69 [0] : vector<2x128xf32> to vector<128xf32>
    %73 = vector.shape_cast %72 : vector<128xf32> to vector<1x128xf32>
    %74 = arith.addf %70, %73 : vector<1x128xf32>
    %c0_70 = arith.constant 0 : index
    %c0_71 = arith.constant 0 : index
    %c5_72 = arith.constant 5 : index
    %c0_73 = arith.constant 0 : index
    %c0_74 = arith.constant 0 : index
    %75 = vector.load %arg5[%c0_70, %c0_71, %c5_72, %c0_73, %c0_74] : memref<1x1x9x1x128xf32, #tpu.memory_space<vmem>>, vector<1x1x1x1x128xf32>
    %76 = vector.shape_cast %75 : vector<1x1x1x1x128xf32> to vector<1x128xf32>
    %77 = vector.shape_cast %74 : vector<1x128xf32> to vector<1x1x1x1x128xf32>
    tpu.vector_store %arg5[%c0_70, %c0_71, %c5_72, %c0_73, %c0_74], %77 {strides = array<i32>} : memref<1x1x9x1x128xf32, #tpu.memory_space<vmem>>, vector<1x1x1x1x128xf32>,
    %c0_75 = arith.constant 0 : index
    %c0_76 = arith.constant 0 : index
    %c6 = arith.constant 6 : index
    %c0_77 = arith.constant 0 : index
    %c0_78 = arith.constant 0 : index
    %78 = vector.load %arg5[%c0_75, %c0_76, %c6, %c0_77, %c0_78] : memref<1x1x9x1x128xf32, #tpu.memory_space<vmem>>, vector<1x1x1x1x128xf32>
    %79 = vector.shape_cast %78 : vector<1x1x1x1x128xf32> to vector<1x128xf32>
    %80 = arith.mulf %18, %22 : vector<2x128xf32>
    %cst_79 = arith.constant dense<0.000000e+00> : vector<128xf32>
    %81 = vector.multi_reduction <add>, %80, %cst_79 [0] : vector<2x128xf32> to vector<128xf32>
    %82 = vector.shape_cast %81 : vector<128xf32> to vector<1x128xf32>
    %83 = arith.addf %79, %82 : vector<1x128xf32>
    %c0_80 = arith.constant 0 : index
    %c0_81 = arith.constant 0 : index
    %c6_82 = arith.constant 6 : index
    %c0_83 = arith.constant 0 : index
    %c0_84 = arith.constant 0 : index
    %84 = vector.load %arg5[%c0_80, %c0_81, %c6_82, %c0_83, %c0_84] : memref<1x1x9x1x128xf32, #tpu.memory_space<vmem>>, vector<1x1x1x1x128xf32>
    %85 = vector.shape_cast %84 : vector<1x1x1x1x128xf32> to vector<1x128xf32>
    %86 = vector.shape_cast %83 : vector<1x128xf32> to vector<1x1x1x1x128xf32>
    tpu.vector_store %arg5[%c0_80, %c0_81, %c6_82, %c0_83, %c0_84], %86 {strides = array<i32>} : memref<1x1x9x1x128xf32, #tpu.memory_space<vmem>>, vector<1x1x1x1x128xf32>,
    %c0_85 = arith.constant 0 : index
    %c0_86 = arith.constant 0 : index
    %c7 = arith.constant 7 : index
    %c0_87 = arith.constant 0 : index
    %c0_88 = arith.constant 0 : index
    %87 = vector.load %arg5[%c0_85, %c0_86, %c7, %c0_87, %c0_88] : memref<1x1x9x1x128xf32, #tpu.memory_space<vmem>>, vector<1x1x1x1x128xf32>
    %88 = vector.shape_cast %87 : vector<1x1x1x1x128xf32> to vector<1x128xf32>
    %89 = arith.mulf %18, %26 : vector<2x128xf32>
    %cst_89 = arith.constant dense<0.000000e+00> : vector<128xf32>
    %90 = vector.multi_reduction <add>, %89, %cst_89 [0] : vector<2x128xf32> to vector<128xf32>
    %91 = vector.shape_cast %90 : vector<128xf32> to vector<1x128xf32>
    %92 = arith.addf %88, %91 : vector<1x128xf32>
    %c0_90 = arith.constant 0 : index
    %c0_91 = arith.constant 0 : index
    %c7_92 = arith.constant 7 : index
    %c0_93 = arith.constant 0 : index
    %c0_94 = arith.constant 0 : index
    %93 = vector.load %arg5[%c0_90, %c0_91, %c7_92, %c0_93, %c0_94] : memref<1x1x9x1x128xf32, #tpu.memory_space<vmem>>, vector<1x1x1x1x128xf32>
    %94 = vector.shape_cast %93 : vector<1x1x1x1x128xf32> to vector<1x128xf32>
    %95 = vector.shape_cast %92 : vector<1x128xf32> to vector<1x1x1x1x128xf32>
    tpu.vector_store %arg5[%c0_90, %c0_91, %c7_92, %c0_93, %c0_94], %95 {strides = array<i32>} : memref<1x1x9x1x128xf32, #tpu.memory_space<vmem>>, vector<1x1x1x1x128xf32>,
    %c0_95 = arith.constant 0 : index
    %c0_96 = arith.constant 0 : index
    %c8 = arith.constant 8 : index
    %c0_97 = arith.constant 0 : index
    %c0_98 = arith.constant 0 : index
    %96 = vector.load %arg5[%c0_95, %c0_96, %c8, %c0_97, %c0_98] : memref<1x1x9x1x128xf32, #tpu.memory_space<vmem>>, vector<1x1x1x1x128xf32>
    %97 = vector.shape_cast %96 : vector<1x1x1x1x128xf32> to vector<1x128xf32>
    %98 = arith.mulf %22, %26 : vector<2x128xf32>
    %cst_99 = arith.constant dense<0.000000e+00> : vector<128xf32>
    %99 = vector.multi_reduction <add>, %98, %cst_99 [0] : vector<2x128xf32> to vector<128xf32>
    %100 = vector.shape_cast %99 : vector<128xf32> to vector<1x128xf32>
    %101 = arith.addf %97, %100 : vector<1x128xf32>
    %c0_100 = arith.constant 0 : index
    %c0_101 = arith.constant 0 : index
    %c8_102 = arith.constant 8 : index
    %c0_103 = arith.constant 0 : index
    %c0_104 = arith.constant 0 : index
    %102 = vector.load %arg5[%c0_100, %c0_101, %c8_102, %c0_103, %c0_104] : memref<1x1x9x1x128xf32, #tpu.memory_space<vmem>>, vector<1x1x1x1x128xf32>
    %103 = vector.shape_cast %102 : vector<1x1x1x1x128xf32> to vector<1x128xf32>
    %104 = vector.shape_cast %101 : vector<1x128xf32> to vector<1x1x1x1x128xf32>
    tpu.vector_store %arg5[%c0_100, %c0_101, %c8_102, %c0_103, %c0_104], %104 {strides = array<i32>} : memref<1x1x9x1x128xf32, #tpu.memory_space<vmem>>, vector<1x1x1x1x128xf32>,
    return
  }
  func.func @transform_0(%arg0: i32, %arg1: i32, %arg2: i32) -> i32 {
    %c0_i32 = arith.constant 0 : i32
    %c0_i32_0 = arith.constant 0 : i32
    return %c0_i32 : i32
  }
  func.func @transform_1(%arg0: i32, %arg1: i32, %arg2: i32) -> (i32, i32, i32, i32) {
    %c1_i32 = arith.constant 1 : i32
    %0 = arith.muli %arg1, %c1_i32 : i32
    %1 = arith.addi %0, %arg2 : i32
    %c0_i32 = arith.constant 0 : i32
    %c0_i32_0 = arith.constant 0 : i32
    %c0_i32_1 = arith.constant 0 : i32
    return %arg0, %c0_i32, %1, %c0_i32_0 : i32, i32, i32, i32
  }
  func.func @transform_2(%arg0: i32, %arg1: i32, %arg2: i32) -> (i32, i32, i32, i32, i32) {
    %c0_i32 = arith.constant 0 : i32
    %c0_i32_0 = arith.constant 0 : i32
    %c0_i32_1 = arith.constant 0 : i32
    %c0_i32_2 = arith.constant 0 : i32
    return %arg0, %arg1, %c0_i32, %c0_i32_0, %c0_i32_1 : i32, i32, i32, i32, i32
  }
}

module attributes {stable_mosaic.version = 11 : i64} {
  func.func @_rotate_kernel(%arg0: i32, %arg1: i32, %arg2: memref<18xf32, #tpu.memory_space<smem>>, %arg3: memref<1x3x2x128xf32, #tpu.memory_space<vmem>>, %arg4: memref<1x3x2x128xf32, #tpu.memory_space<vmem>>) attributes {dimension_semantics = [#tpu.dimension_semantics<parallel>, #tpu.dimension_semantics<parallel>], iteration_bounds = array<i64: 2, 1>, scalar_prefetch = 0 : i64, scratch_operands = 0 : i64, tpu.core_type = #tpu.core_type<tc>, window_params = [{transform_indices = @transform_0, window_bounds = array<i64: 18>}, {transform_indices = @transform_1, window_bounds = array<i64: 1, 3, 2, 128>}, {transform_indices = @transform_2, window_bounds = array<i64: 1, 3, 2, 128>}]} {
    %c9_i32 = arith.constant 9 : i32
    %0 = arith.muli %c9_i32, %arg0 : i32
    %c0_i32 = arith.constant 0 : i32
    %1 = arith.addi %0, %c0_i32 : i32
    %2 = arith.index_cast %1 : i32 to index
    %3 = memref.load %arg2[%2] : memref<18xf32, #tpu.memory_space<smem>>
    %c9_i32_0 = arith.constant 9 : i32
    %4 = arith.muli %c9_i32_0, %arg0 : i32
    %c1_i32 = arith.constant 1 : i32
    %5 = arith.addi %4, %c1_i32 : i32
    %6 = arith.index_cast %5 : i32 to index
    %7 = memref.load %arg2[%6] : memref<18xf32, #tpu.memory_space<smem>>
    %c9_i32_1 = arith.constant 9 : i32
    %8 = arith.muli %c9_i32_1, %arg0 : i32
    %c2_i32 = arith.constant 2 : i32
    %9 = arith.addi %8, %c2_i32 : i32
    %10 = arith.index_cast %9 : i32 to index
    %11 = memref.load %arg2[%10] : memref<18xf32, #tpu.memory_space<smem>>
    %c9_i32_2 = arith.constant 9 : i32
    %12 = arith.muli %c9_i32_2, %arg0 : i32
    %c3_i32 = arith.constant 3 : i32
    %13 = arith.addi %12, %c3_i32 : i32
    %14 = arith.index_cast %13 : i32 to index
    %15 = memref.load %arg2[%14] : memref<18xf32, #tpu.memory_space<smem>>
    %c9_i32_3 = arith.constant 9 : i32
    %16 = arith.muli %c9_i32_3, %arg0 : i32
    %c4_i32 = arith.constant 4 : i32
    %17 = arith.addi %16, %c4_i32 : i32
    %18 = arith.index_cast %17 : i32 to index
    %19 = memref.load %arg2[%18] : memref<18xf32, #tpu.memory_space<smem>>
    %c9_i32_4 = arith.constant 9 : i32
    %20 = arith.muli %c9_i32_4, %arg0 : i32
    %c5_i32 = arith.constant 5 : i32
    %21 = arith.addi %20, %c5_i32 : i32
    %22 = arith.index_cast %21 : i32 to index
    %23 = memref.load %arg2[%22] : memref<18xf32, #tpu.memory_space<smem>>
    %c9_i32_5 = arith.constant 9 : i32
    %24 = arith.muli %c9_i32_5, %arg0 : i32
    %c6_i32 = arith.constant 6 : i32
    %25 = arith.addi %24, %c6_i32 : i32
    %26 = arith.index_cast %25 : i32 to index
    %27 = memref.load %arg2[%26] : memref<18xf32, #tpu.memory_space<smem>>
    %c9_i32_6 = arith.constant 9 : i32
    %28 = arith.muli %c9_i32_6, %arg0 : i32
    %c7_i32 = arith.constant 7 : i32
    %29 = arith.addi %28, %c7_i32 : i32
    %30 = arith.index_cast %29 : i32 to index
    %31 = memref.load %arg2[%30] : memref<18xf32, #tpu.memory_space<smem>>
    %c9_i32_7 = arith.constant 9 : i32
    %32 = arith.muli %c9_i32_7, %arg0 : i32
    %c8_i32 = arith.constant 8 : i32
    %33 = arith.addi %32, %c8_i32 : i32
    %34 = arith.index_cast %33 : i32 to index
    %35 = memref.load %arg2[%34] : memref<18xf32, #tpu.memory_space<smem>>
    %c0 = arith.constant 0 : index
    %c0_8 = arith.constant 0 : index
    %c0_9 = arith.constant 0 : index
    %c0_10 = arith.constant 0 : index
    %36 = vector.load %arg3[%c0, %c0_8, %c0_9, %c0_10] : memref<1x3x2x128xf32, #tpu.memory_space<vmem>>, vector<1x1x2x128xf32>
    %37 = vector.shape_cast %36 : vector<1x1x2x128xf32> to vector<2x128xf32>
    %c0_11 = arith.constant 0 : index
    %c1 = arith.constant 1 : index
    %c0_12 = arith.constant 0 : index
    %c0_13 = arith.constant 0 : index
    %38 = vector.load %arg3[%c0_11, %c1, %c0_12, %c0_13] : memref<1x3x2x128xf32, #tpu.memory_space<vmem>>, vector<1x1x2x128xf32>
    %39 = vector.shape_cast %38 : vector<1x1x2x128xf32> to vector<2x128xf32>
    %c0_14 = arith.constant 0 : index
    %c2 = arith.constant 2 : index
    %c0_15 = arith.constant 0 : index
    %c0_16 = arith.constant 0 : index
    %40 = vector.load %arg3[%c0_14, %c2, %c0_15, %c0_16] : memref<1x3x2x128xf32, #tpu.memory_space<vmem>>, vector<1x1x2x128xf32>
    %41 = vector.shape_cast %40 : vector<1x1x2x128xf32> to vector<2x128xf32>
    %42 = vector.broadcast %3 : f32 to vector<2x128xf32>
    %43 = arith.mulf %42, %37 : vector<2x128xf32>
    %44 = vector.broadcast %7 : f32 to vector<2x128xf32>
    %45 = arith.mulf %44, %39 : vector<2x128xf32>
    %46 = arith.addf %43, %45 : vector<2x128xf32>
    %47 = vector.broadcast %11 : f32 to vector<2x128xf32>
    %48 = arith.mulf %47, %41 : vector<2x128xf32>
    %49 = arith.addf %46, %48 : vector<2x128xf32>
    %c0_17 = arith.constant 0 : index
    %c0_18 = arith.constant 0 : index
    %c0_19 = arith.constant 0 : index
    %c0_20 = arith.constant 0 : index
    %50 = vector.load %arg4[%c0_17, %c0_18, %c0_19, %c0_20] : memref<1x3x2x128xf32, #tpu.memory_space<vmem>>, vector<1x1x2x128xf32>
    %51 = vector.shape_cast %50 : vector<1x1x2x128xf32> to vector<2x128xf32>
    %52 = vector.shape_cast %49 : vector<2x128xf32> to vector<1x1x2x128xf32>
    tpu.vector_store %arg4[%c0_17, %c0_18, %c0_19, %c0_20], %52 {strides = array<i32>} : memref<1x3x2x128xf32, #tpu.memory_space<vmem>>, vector<1x1x2x128xf32>,
    %53 = vector.broadcast %15 : f32 to vector<2x128xf32>
    %54 = arith.mulf %53, %37 : vector<2x128xf32>
    %55 = vector.broadcast %19 : f32 to vector<2x128xf32>
    %56 = arith.mulf %55, %39 : vector<2x128xf32>
    %57 = arith.addf %54, %56 : vector<2x128xf32>
    %58 = vector.broadcast %23 : f32 to vector<2x128xf32>
    %59 = arith.mulf %58, %41 : vector<2x128xf32>
    %60 = arith.addf %57, %59 : vector<2x128xf32>
    %c0_21 = arith.constant 0 : index
    %c1_22 = arith.constant 1 : index
    %c0_23 = arith.constant 0 : index
    %c0_24 = arith.constant 0 : index
    %61 = vector.load %arg4[%c0_21, %c1_22, %c0_23, %c0_24] : memref<1x3x2x128xf32, #tpu.memory_space<vmem>>, vector<1x1x2x128xf32>
    %62 = vector.shape_cast %61 : vector<1x1x2x128xf32> to vector<2x128xf32>
    %63 = vector.shape_cast %60 : vector<2x128xf32> to vector<1x1x2x128xf32>
    tpu.vector_store %arg4[%c0_21, %c1_22, %c0_23, %c0_24], %63 {strides = array<i32>} : memref<1x3x2x128xf32, #tpu.memory_space<vmem>>, vector<1x1x2x128xf32>,
    %64 = vector.broadcast %27 : f32 to vector<2x128xf32>
    %65 = arith.mulf %64, %37 : vector<2x128xf32>
    %66 = vector.broadcast %31 : f32 to vector<2x128xf32>
    %67 = arith.mulf %66, %39 : vector<2x128xf32>
    %68 = arith.addf %65, %67 : vector<2x128xf32>
    %69 = vector.broadcast %35 : f32 to vector<2x128xf32>
    %70 = arith.mulf %69, %41 : vector<2x128xf32>
    %71 = arith.addf %68, %70 : vector<2x128xf32>
    %c0_25 = arith.constant 0 : index
    %c2_26 = arith.constant 2 : index
    %c0_27 = arith.constant 0 : index
    %c0_28 = arith.constant 0 : index
    %72 = vector.load %arg4[%c0_25, %c2_26, %c0_27, %c0_28] : memref<1x3x2x128xf32, #tpu.memory_space<vmem>>, vector<1x1x2x128xf32>
    %73 = vector.shape_cast %72 : vector<1x1x2x128xf32> to vector<2x128xf32>
    %74 = vector.shape_cast %71 : vector<2x128xf32> to vector<1x1x2x128xf32>
    tpu.vector_store %arg4[%c0_25, %c2_26, %c0_27, %c0_28], %74 {strides = array<i32>} : memref<1x3x2x128xf32, #tpu.memory_space<vmem>>, vector<1x1x2x128xf32>,
    return
  }
  func.func @transform_0(%arg0: i32, %arg1: i32) -> i32 {
    %c0_i32 = arith.constant 0 : i32
    %c0_i32_0 = arith.constant 0 : i32
    return %c0_i32 : i32
  }
  func.func @transform_1(%arg0: i32, %arg1: i32) -> (i32, i32, i32, i32) {
    %c0_i32 = arith.constant 0 : i32
    %c0_i32_0 = arith.constant 0 : i32
    %c0_i32_1 = arith.constant 0 : i32
    return %arg0, %c0_i32, %arg1, %c0_i32_0 : i32, i32, i32, i32
  }
  func.func @transform_2(%arg0: i32, %arg1: i32) -> (i32, i32, i32, i32) {
    %c0_i32 = arith.constant 0 : i32
    %c0_i32_0 = arith.constant 0 : i32
    %c0_i32_1 = arith.constant 0 : i32
    return %arg0, %c0_i32, %arg1, %c0_i32_0 : i32, i32, i32, i32
  }
}

</mosaic_0001>

<bundles_post_ra>
// kernel: squeeze.25
= control target key start
LH: loop header
LB: loop body
LE: loop exit
PB: predicated region body
PF: predicated region fallthrough
CT: control target
= control target key end

     0   :  { %vm7_vm0 = vcmask 23552   ;;  %vm13_vm1 = vcmask 48152   ;;  %s39_s0 = inlined_call_operand.vmem [shape: f32[2,3,1], index: 0, kind: input, shape index: {}]   ;;  %s40_s1 = inlined_call_operand.vmem [shape: f32[6], index: 1, kind: output, shape index: {}]  }
   0x1   :  { %v4_v0 = vld [vmem:[%s39_s0] sm:$0x3]  ;;  %s22_s0 = smov 3  }
   0x2   :  { %5 = vst [vmem:[#allocation1] sm:$0x3] %v4_v0 }
   0x9   :  { %v10_v1 = vld [vmem:[#allocation1 + $0x1] sm:$0x1]   ;;  %v6_v2 = vld [vmem:[#allocation1] sm:$0x1]  }
   0xa   :  { %11 = vrot.lane.b32.xlu0 %v10_v1, %s22_s0  ;;  %8 = vst.msk [vmem:[#allocation0] sm:$0x1] %vm7_vm0, %v6_v2  }
  0x7c   :  { %v12_v3 = vpop.permute.xlu0 %11  }
  0x7d   :  { %14 = vst.msk [vmem:[#allocation0] sm:$0x1] %vm13_vm1, %v12_v3  }
  0x84   :  { %v18_v4 = vld [vmem:[#allocation0] sm:$0x1] }
  0x85   :  { %20 = vst [vmem:[%s40_s1] sm:$0x1] %v18_v4 }

// kernel: rotate_pca.2
= control target key start
LH: loop header
LB: loop body
LE: loop exit
PB: predicated region body
PF: predicated region fallthrough
CT: control target
= control target key end

     0   :  { %7 = vsyncpa [#allocation3], 0  ;;  %s563_s9 = smov 0   ;;  %s565_s10 = smov 0   ;;  %s675_s0 = inlined_call_operand.vmem [shape: f32[6], index: 0, kind: input, shape index: {}]   ;;  %s676_s1 = inlined_call_operand.vmem [shape: f32[2,3,2,128], index: 1, kind: input, shape index: {}]   ;;  %s677_s2 = inlined_call_operand.vmem [shape: f32[2,1,9,1,128], index: 2, kind: output, shape index: {}]  }
   0x1   :  { %s567_s11 = smov 0  }
   0x2 LB: > { %s437_s12 = sadd.s32 4294967295, %s544_s11   ;;  %s32_s13 = sadd.s32 1, %s540_s10  ;;  %s544_s11 = sphi %s567_s11, %s13_s11   ;;  %s540_s10 = sphi %s565_s10, %s681_s10   ;;  %s536_s9 = sphi %s563_s9, %s680_s9  }
   0x3   : > { %p34_p0 = scmp.ge.s32.totalorder %s32_s13, 2  ;;  %p439_p1 = scmp.ge.s32.totalorder %s544_s11, 1 }
   0x4   : > { %p116_p2 = scmp.lt.s32.totalorder %s544_s11, 3  ;;  %p588_p4 = scmp.eq.s32.totalorder %s437_s12, 0 }
   0x5   : > { %s683_s13 = smov (%p34_p0, %s32_s13), 0  ;;  %s129_s18 = sshll.u32 %s675_s0, 4  ;;  %s130_s18 = int_to_ptr.vmem [resolvable:$true] %s129_s18 }
   0x6   : > { %p584_p3 = pnand %p439_p1, %p116_p2  ;;  %s503_s19 = scalar_lea.vmem %s130_s18, 16 }
   0x7   : > { %p504_p7 = scmp.ne.s32.totalorder %s130_s18, %s503_s19  ;;  %p511_p11 = scmp.lt.s32.totalorder %s130_s18, %s130_s18 }
   0x8   : > { %p471_p5 = pneg %p584_p3  ;;  %p512_p12 = scmp.lt.s32.totalorder %s503_s19, %s503_s19 }
   0xa   : > { %p472_p6 = pnand %p588_p4, %p471_p5  ;;  %p513_p13 = por %p512_p12, %p511_p11 }
   0xc   : > { %p505_p8 = pneg %p472_p6 }
   0xe   : > { %p506_p9 = pnand %p505_p8, %p504_p7 }
  0x10   : > { %p507_p10 = pneg %p506_p9 }
  0x12   : > { %p514_p0 = pnand %p513_p13, %p507_p10 }
  0x14   : > { %517 = shalt.err (!%p514_p0)
}
  0x15   : > { %s546_s20 = smov [#allocation2]   ;;  %155 = sbr.rel (%p584_p3) target bundleno = 74 (0x4a), region = 28 }
  0x16   : > { %474 = dma.vmem_to_smem (!%p472_p6), %s130_s18, 16, %s546_s20, [#allocation3]  }
  0x1c   : > { %531 = dma.done.wait (%p588_p4), [#allocation3], 16  }
  0x1d   : > { %533 = vsyncadd (%p588_p4), [#allocation3], 4294967280 }
  0x1e   : > { %161 = sfence }
  0x1f   : > { %p186_p1 = scmp.lt.s32.totalorder %s536_s9, 1  ;;  %s216_s21 = smul.u32 3, %s536_s9  ;;  %v547_v0 = vmov 0.0   ;;  %vm234_vm0 = vcmask 1041408  }
  0x21   : > { %s685_s9 = smov (!%p186_p1, %s536_s9), 1  ;;  %s217_s22 = sld [smem:[#allocation2 + %s216_s21]] }
  0x22   : > { %s218_s23 = sadd.s32 1, %s216_s21  ;;  %s466_s24 = smul.u32 9, %s685_s9 }
  0x23   : > { %s219_s25 = sld [smem:[#allocation2 + %s218_s23]]  ;;  %s465_s26 = smul.u32 6, %s685_s9 }
  0x24   : > { %s220_s27 = sadd.s32 2, %s216_s21  ;;  %s611_s30 = scalar_lea.vmem %s677_s2, %s466_s24 }
  0x25   : > { %s221_s3 = sld [smem:[#allocation2 + %s220_s27]]  ;;  %207 = vst [vmem:[%s611_s30] sm:$0x1] %v547_v0  ;;  %208 = vst [vmem:[%s611_s30 + $0x1] sm:$0x1] %v547_v0  ;;  %s193_s6 = scalar_lea.vmem %s676_s1, %s465_s26 }
  0x26   : > { %209 = vst [vmem:[%s611_s30 + $0x2] sm:$0x1] %v547_v0  ;;  %210 = vst [vmem:[%s611_s30 + $0x3] sm:$0x1] %v547_v0  ;;  %v222_v1 = vld [vmem:[%s193_s6] sm:$0x3] }
  0x27   : > { %211 = vst [vmem:[%s611_s30 + $0x4] sm:$0x1] %v547_v0  ;;  %212 = vst [vmem:[%s611_s30 + $0x5] sm:$0x1] %v547_v0  ;;  %v445_v2 = vld [vmem:[%s193_s6 + $0x2] sm:$0x3]  ;;  %v223_v3 = vstv %s217_s22 }
  0x28   : > { %213 = vst [vmem:[%s611_s30 + $0x6] sm:$0x1] %v547_v0  ;;  %214 = vst [vmem:[%s611_s30 + $0x7] sm:$0x1] %v547_v0  ;;  %v224_v4 = vsub.f32 %v222_v1, %v223_v3  ;;  %v446_v6 = vld [vmem:[%s193_s6 + $0x4] sm:$0x3] }
  0x29   : > { %215 = vst [vmem:[%s611_s30 + $0x8] sm:$0x1] %v547_v0  ;;  %v227_v5 = vstv %s219_s25 }
  0x2a   : > { %v625_v7 = vsub.f32 %v445_v2, %v227_v5  ;;  %v235_v8 = vsel %vm234_vm0, %v224_v4, 0.0  ;;  %v268_v10 = vmul.f32 %v224_v4, %v224_v4 }
  0x2b   : > { %v231_v9 = vstv %s221_s3  ;;  %v236_v11 = vrot.slane %v235_v8, 4 }
  0x2c   : > { %v246_v12 = vsel %vm234_vm0, %v625_v7, 0.0  ;;  %v630_v13 = vsub.f32 %v446_v6, %v231_v9  ;;  %v280_v14 = vmul.f32 %v625_v7, %v625_v7  ;;  %v269_v16 = vsel %vm234_vm0, %v268_v10, 0.0  ;;  %v233_v46 = vld [vmem:[%s611_s30] sm:$0x1]  ;;  %v447_v52 = vld [vmem:[%s611_s30 + $0x1] sm:$0x1] }
  0x2d   : > { %v247_v15 = vrot.slane %v246_v12, 4  ;;  %v304_v17 = vmul.f32 %v625_v7, %v224_v4  ;;  %v237_v18 = vadd.f32 %v236_v11, %v235_v8  ;;  %v270_v20 = vrot.slane %v269_v16, 4  ;;  %v451_v58 = vld [vmem:[%s611_s30 + $0x3] sm:$0x1]  ;;  %v449_v62 = vld [vmem:[%s611_s30 + $0x2] sm:$0x1] }
  0x2e   : > { %v257_v19 = vsel %vm234_vm0, %v630_v13, 0.0  ;;  %v292_v21 = vmul.f32 %v630_v13, %v630_v13  ;;  %v281_v24 = vsel %vm234_vm0, %v280_v14, 0.0  ;;  %v316_v25 = vmul.f32 %v630_v13, %v224_v4  ;;  %v453_v4 = vld [vmem:[%s611_s30 + $0x4] sm:$0x1]  ;;  %v455_v10 = vld [vmem:[%s611_s30 + $0x5] sm:$0x1] }
  0x2f   : > { %v248_v22 = vadd.f32 %v247_v15, %v246_v12  ;;  %v258_v23 = vrot.slane %v257_v19, 4  ;;  %v238_v26 = vrot.slane %v237_v18, 2  ;;  %v271_v27 = vadd.f32 %v270_v20, %v269_v16  ;;  %v457_v16 = vld [vmem:[%s611_s30 + $0x6] sm:$0x1] }
  0x30   : > { %v282_v28 = vrot.slane %v281_v24, 4  ;;  %v293_v29 = vsel %vm234_vm0, %v292_v21, 0.0  ;;  %v305_v33 = vsel %vm234_vm0, %v304_v17, 0.0  ;;  %v317_v41 = vsel %vm234_vm0, %v316_v25, 0.0 }
  0x31   : > { %v249_v30 = vrot.slane %v248_v22, 2  ;;  %v259_v31 = vadd.f32 %v258_v23, %v257_v19  ;;  %v294_v32 = vrot.slane %v293_v29, 4  ;;  %v239_v34 = vadd.f32 %v238_v26, %v237_v18 }
  0x32   : > { %v272_v35 = vrot.slane %v271_v27, 2  ;;  %v283_v36 = vadd.f32 %v282_v28, %v281_v24  ;;  %v306_v37 = vrot.slane %v305_v33, 4  ;;  %v318_v50 = vrot.slane %v317_v41, 4 }
  0x33   : > { %v250_v38 = vadd.f32 %v249_v30, %v248_v22  ;;  %v260_v39 = vrot.slane %v259_v31, 2  ;;  %v295_v40 = vadd.f32 %v294_v32, %v293_v29  ;;  %v240_v42 = vrot.slane %v239_v34, 1  ;;  %v461_v30 = vld [vmem:[%s611_s30 + $0x8] sm:$0x1] }
  0x34   : > { %v273_v43 = vadd.f32 %v272_v35, %v271_v27  ;;  %v284_v44 = vrot.slane %v283_v36, 2  ;;  %v307_v45 = vadd.f32 %v306_v37, %v305_v33  ;;  %v319_v60 = vadd.f32 %v318_v50, %v317_v41 }
  0x35   : > { %v251_v47 = vrot.slane %v250_v38, 1  ;;  %v261_v48 = vadd.f32 %v260_v39, %v259_v31  ;;  %v296_v49 = vrot.slane %v295_v40, 2  ;;  %v241_v51 = vadd.f32 %v240_v42, %v239_v34 }
  0x36   : > { %v274_v53 = vrot.slane %v273_v43, 1  ;;  %v285_v54 = vadd.f32 %v284_v44, %v283_v36  ;;  %v308_v55 = vrot.slane %v307_v45, 2  ;;  %v320_v6 = vrot.slane %v319_v60, 2 }
  0x37   : > { %v252_v56 = vadd.f32 %v251_v47, %v250_v38  ;;  %v262_v57 = vrot.slane %v261_v48, 1  ;;  %v297_v59 = vadd.f32 %v296_v49, %v295_v40  ;;  %v242_v61 = vadd.f32 %v241_v51, %v233_v46 }
  0x38   : > { %v275_v63 = vadd.f32 %v274_v53, %v273_v43  ;;  %v286_v0 = vrot.slane %v285_v54, 1  ;;  %v309_v1 = vadd.f32 %v308_v55, %v307_v45  ;;  %v328_v12 = vmul.f32 %v630_v13, %v625_v7  ;;  %v459_v13 = vld [vmem:[%s611_s30 + $0x7] sm:$0x1] }
  0x39   : > { %v253_v2 = vadd.f32 %v447_v52, %v252_v56  ;;  %v263_v3 = vadd.f32 %v262_v57, %v261_v48  ;;  %v298_v5 = vrot.slane %v297_v59, 1  ;;  %243 = vst [vmem:[%s611_s30] sm:$0x1] %v242_v61  ;;  %v321_v17 = vadd.f32 %v320_v6, %v319_v60 }
  0x3a   : > { %v276_v8 = vadd.f32 %v451_v58, %v275_v63  ;;  %v287_v9 = vadd.f32 %v286_v0, %v285_v54  ;;  %v310_v11 = vrot.slane %v309_v1, 1  ;;  %v329_v20 = vsel %vm234_vm0, %v328_v12, 0.0 }
  0x3b   : > { %448 = vst [vmem:[%s611_s30 + $0x1] sm:$0x1] %v253_v2  ;;  %v264_v14 = vadd.f32 %v449_v62, %v263_v3  ;;  %v299_v15 = vadd.f32 %v298_v5, %v297_v59  ;;  %v322_v22 = vrot.slane %v321_v17, 1  ;;  %v330_v23 = vrot.slane %v329_v20, 4 }
  0x3c   : > { %452 = vst [vmem:[%s611_s30 + $0x3] sm:$0x1] %v276_v8  ;;  %v288_v18 = vadd.f32 %v453_v4, %v287_v9  ;;  %v311_v19 = vadd.f32 %v310_v11, %v309_v1 }
  0x3d   : > { %450 = vst [vmem:[%s611_s30 + $0x2] sm:$0x1] %v264_v14  ;;  %v300_v21 = vadd.f32 %v455_v10, %v299_v15  ;;  %v323_v24 = vadd.f32 %v322_v22, %v321_v17  ;;  %v331_v25 = vadd.f32 %v330_v23, %v329_v20 }
  0x3e   : > { %454 = vst [vmem:[%s611_s30 + $0x4] sm:$0x1] %v288_v18  ;;  %v312_v7 = vadd.f32 %v457_v16, %v311_v19 }
  0x3f   : > { %456 = vst [vmem:[%s611_s30 + $0x5] sm:$0x1] %v300_v21  ;;  %v324_v26 = vadd.f32 %v459_v13, %v323_v24  ;;  %v332_v27 = vrot.slane %v331_v25, 2 }
  0x40   : > { %458 = vst [vmem:[%s611_s30 + $0x6] sm:$0x1] %v312_v7 }
  0x41   : > { %460 = vst [vmem:[%s611_s30 + $0x7] sm:$0x1] %v324_v26  ;;  %v333_v28 = vadd.f32 %v332_v27, %v331_v25 }
  0x43   : > { %v334_v29 = vrot.slane %v333_v28, 1 }
  0x45   : > { %v335_v31 = vadd.f32 %v334_v29, %v333_v28 }
  0x47   : > { %v336_v32 = vadd.f32 %v461_v30, %v335_v31 }
  0x49   : > { %462 = vst [vmem:[%s611_s30 + $0x8] sm:$0x1] %v336_v32 }
  0x4a PF: > { %s13_s11 = sadd.s32 1, %s544_s11   ;;  %s680_s9 = smov %s540_s10 }
  0x4b   : > { %p10_p2 = scmp.ge.s32.totalorder %s13_s11, 4   ;;  %s681_s10 = smov %s683_s13 }
  0x4d   :  { %12 = sbr.rel (!%p10_p2) target bundleno = 2 (0x2), region = 77 }
  0x54   :  { %365 = vsyncpa [#allocation3], 1 }
  0x55   :  { %367 = vsyncpa [#allocation3 + $0x1], 1 }

// kernel: rotate_pca.3
= control target key start
LH: loop header
LB: loop body
LE: loop exit
PB: predicated region body
PF: predicated region fallthrough
CT: control target
= control target key end

     0   :  { %7 = vsyncpa [#allocation3], 0  ;;  %s447_s9 = smov 0   ;;  %s449_s10 = smov 0   ;;  %s525_s0 = inlined_call_operand.vmem [shape: f32[18], index: 0, kind: input, shape index: {}]   ;;  %s526_s1 = inlined_call_operand.vmem [shape: f32[2,3,2,128], index: 1, kind: input, shape index: {}]   ;;  %s527_s2 = inlined_call_operand.vmem [shape: f32[2,3,2,128], index: 2, kind: output, shape index: {}]  }
   0x1   :  { %s451_s11 = smov 0  }
   0x2 LB: > { %s337_s12 = sadd.s32 4294967295, %s429_s11   ;;  %s25_s13 = sadd.s32 1, %s425_s10  ;;  %s429_s11 = sphi %s451_s11, %s13_s11   ;;  %s425_s10 = sphi %s449_s10, %s531_s10   ;;  %s421_s9 = sphi %s447_s9, %s530_s9  }
   0x3   : > { %p27_p0 = scmp.ge.s32.totalorder %s25_s13, 2  ;;  %p339_p1 = scmp.ge.s32.totalorder %s429_s11, 1 }
   0x4   : > { %p107_p2 = scmp.lt.s32.totalorder %s429_s11, 3  ;;  %p472_p4 = scmp.eq.s32.totalorder %s337_s12, 0 }
   0x5   : > { %s533_s13 = smov (%p27_p0, %s25_s13), 0  ;;  %s120_s18 = sshll.u32 %s525_s0, 4  ;;  %s121_s18 = int_to_ptr.vmem [resolvable:$true] %s120_s18 }
   0x6   : > { %p468_p3 = pnand %p339_p1, %p107_p2  ;;  %s388_s19 = scalar_lea.vmem %s121_s18, 16 }
   0x7   : > { %p389_p7 = scmp.ne.s32.totalorder %s121_s18, %s388_s19  ;;  %p396_p11 = scmp.lt.s32.totalorder %s121_s18, %s121_s18 }
   0x8   : > { %p357_p5 = pneg %p468_p3  ;;  %p397_p12 = scmp.lt.s32.totalorder %s388_s19, %s388_s19 }
   0xa   : > { %p358_p6 = pnand %p472_p4, %p357_p5  ;;  %p398_p13 = por %p397_p12, %p396_p11 }
   0xc   : > { %p390_p8 = pneg %p358_p6 }
   0xe   : > { %p391_p9 = pnand %p390_p8, %p389_p7 }
  0x10   : > { %p392_p10 = pneg %p391_p9 }
  0x12   : > { %p399_p0 = pnand %p398_p13, %p392_p10 }
  0x14   : > { %402 = shalt.err (!%p399_p0)
}
  0x15   : > { %s431_s20 = smov [#allocation2]   ;;  %144 = sbr.rel (%p468_p3) target bundleno = 56 (0x38), region = 28 }
  0x16   : > { %360 = dma.vmem_to_smem (!%p358_p6), %s121_s18, 16, %s431_s20, [#allocation3]  }
  0x1c   : > { %416 = dma.done.wait (%p472_p4), [#allocation3], 16  }
  0x1d   : > { %418 = vsyncadd (%p472_p4), [#allocation3], 4294967280 }
  0x1e   : > { %150 = sfence }
  0x1f   : > { %p173_p1 = scmp.lt.s32.totalorder %s421_s9, 1  ;;  %s491_s21 = smul.u32 9, %s421_s9 }
  0x21   : > { %s535_s9 = smov (!%p173_p1, %s421_s9), 1  ;;  %s190_s22 = sld [smem:[#allocation2 + %s491_s21]] }
  0x22   : > { %s191_s23 = sadd.s32 1, %s491_s21  ;;  %s352_s24 = smul.u32 6, %s535_s9 }
  0x23   : > { %s192_s25 = sld [smem:[#allocation2 + %s191_s23]]  ;;  %s193_s26 = sadd.s32 2, %s491_s21 }
  0x24   : > { %s195_s27 = sadd.s32 3, %s491_s21  ;;  %s180_s30 = scalar_lea.vmem %s526_s1, %s352_s24 }
  0x25   : > { %s194_s3 = sld [smem:[#allocation2 + %s193_s26]]  ;;  %v207_v0 = vld [vmem:[%s180_s30] sm:$0x3]  ;;  %v346_v1 = vld [vmem:[%s180_s30 + $0x2] sm:$0x3]  ;;  %s197_s5 = sadd.s32 4, %s491_s21 }
  0x26   : > { %s196_s4 = sld [smem:[#allocation2 + %s195_s27]]  ;;  %s199_s6 = sadd.s32 5, %s491_s21  ;;  %v347_v5 = vld [vmem:[%s180_s30 + $0x4] sm:$0x3] }
  0x27   : > { %v212_v2 = vstv %s190_s22  ;;  %s198_s7 = sld [smem:[#allocation2 + %s197_s5]]  ;;  %s201_s12 = sadd.s32 6, %s491_s21 }
  0x28   : > { %s200_s8 = sld [smem:[#allocation2 + %s199_s6]]  ;;  %v213_v3 = vmul.f32 %v212_v2, %v207_v0  ;;  %s203_s14 = sadd.s32 7, %s491_s21 }
  0x29   : > { %v214_v4 = vstv %s192_s25  ;;  %s202_s15 = sld [smem:[#allocation2 + %s201_s12]]  ;;  %s205_s17 = sadd.s32 8, %s491_s21 }
  0x2a   : > { %v215_v6 = vmul.f32 %v346_v1, %v214_v4  ;;  %s204_s16 = sld [smem:[#allocation2 + %s203_s14]]  ;;  %s188_s22 = scalar_lea.vmem %s527_s2, %s352_s24 }
  0x2b   : > { %v217_v8 = vstv %s194_s3  ;;  %s206_s18 = sld [smem:[#allocation2 + %s205_s17]] }
  0x2c   : > { %v216_v7 = vadd.f32 %v215_v6, %v213_v3  ;;  %v221_v9 = vstv %s196_s4  ;;  %v218_v10 = vmul.f32 %v347_v5, %v217_v8 }
  0x2d   : > { %v222_v11 = vmul.f32 %v221_v9, %v207_v0  ;;  %v223_v12 = vstv %s198_s7 }
  0x2e   : > { %v226_v13 = vstv %s200_s8  ;;  %v219_v14 = vadd.f32 %v218_v10, %v216_v7  ;;  %v224_v15 = vmul.f32 %v346_v1, %v223_v12 }
  0x2f   : > { %v227_v16 = vmul.f32 %v347_v5, %v226_v13  ;;  %v231_v17 = vstv %s202_s15 }
  0x30   : > { %v233_v18 = vstv %s204_s16  ;;  %220 = vst [vmem:[%s188_s22] sm:$0x3] %v219_v14  ;;  %v225_v19 = vadd.f32 %v224_v15, %v222_v11  ;;  %v232_v20 = vmul.f32 %v231_v17, %v207_v0 }
  0x31   : > { %v234_v21 = vmul.f32 %v346_v1, %v233_v18  ;;  %v236_v22 = vstv %s206_s18 }
  0x32   : > { %v228_v23 = vadd.f32 %v227_v16, %v225_v19  ;;  %v237_v25 = vmul.f32 %v347_v5, %v236_v22 }
  0x33   : > { %v235_v24 = vadd.f32 %v234_v21, %v232_v20 }
  0x34   : > { %348 = vst [vmem:[%s188_s22 + $0x2] sm:$0x3] %v228_v23 }
  0x35   : > { %v238_v26 = vadd.f32 %v237_v25, %v235_v24 }
  0x37   : > { %349 = vst [vmem:[%s188_s22 + $0x4] sm:$0x3] %v238_v26 }
  0x38 PF: > { %s13_s11 = sadd.s32 1, %s429_s11   ;;  %s530_s9 = smov %s425_s10 }
  0x39   : > { %p10_p2 = scmp.ge.s32.totalorder %s13_s11, 4   ;;  %s531_s10 = smov %s533_s13 }
  0x3b   :  { %12 = sbr.rel (!%p10_p2) target bundleno = 2 (0x2), region = 67 }
  0x42   :  { %268 = vsyncpa [#allocation3], 1 }
  0x43   :  { %270 = vsyncpa [#allocation3 + $0x1], 1 }

</bundles_post_ra>
